<compile_context>
chip_gen: v7x
topology: tpu7x:2x2x1
jax: 0.10.0
libtpu: 0.0.40
codegen_flags: <defaults>
</compile_context>

<pallas_src>
import jax
import jax.numpy as jnp
from jax.experimental import pallas as pl
from jax.experimental.pallas import tpu as pltpu


def _round_up(n, m):
    return ((n + m - 1) // m) * m


def _make_kernel(bt, b_valid, need_mask):
    def kernel(x_ref, w1_ref, b1_ref, w2_ref, out_ref):
        # x_ref:   (bt, Dp)     activations for this batch tile (bf16 or f32)
        # w1_ref:  (Dp, EHp)    ensemble-flattened first-layer weights (resident)
        # b1_ref:  (1, EHp)     ensemble-flattened first-layer bias, f32 (resident)
        # w2_ref:  (EHp, Cp)    ensemble-stacked second-layer weights (resident)
        # out_ref: (1, 1, Cp)   partial sum over this batch tile of sum_e logits_e
        h = jnp.dot(x_ref[...], w1_ref[...], preferred_element_type=jnp.float32)
        h = jnp.maximum(h + b1_ref[...], 0.0)                 # (bt, EHp) f32, VPU
        if need_mask:
            # zero the batch-padding rows of this tile before reducing
            rows = (jax.lax.broadcasted_iota(jnp.int32, (bt, 1), 0)
                    + pl.program_id(0) * bt)
            h = jnp.where(rows < b_valid, h, 0.0)
        # Reduce over the batch BEFORE the second matmul (h enters it linearly).
        hsum = jnp.sum(h, axis=0, keepdims=True)              # (1, EHp) f32
        w2 = w2_ref[...].astype(jnp.float32)
        o = jnp.dot(hsum, w2, preferred_element_type=jnp.float32)  # (1, Cp)
        out_ref[...] = o[None]                                # lane-dense (1,1,Cp) store
    return kernel


def ensemble_forward(x, w1, b1, w2, b2, *, batch_tile=None, use_bf16=True):
    """x: (B, D); w1: (E, D, H); b1: (E, 1, H); w2: (E, H, C); b2: (E, 1, C).
    Returns (C,) = mean over ensemble members and batch of the classifier outputs.
    use_bf16=True runs the matmuls on the MXU in bf16 with f32 accumulation
    (caller opt-in numerics); use_bf16=False matches the reference to ~1e-4."""
    B, D = x.shape
    E, _, H = w1.shape
    C = w2.shape[-1]
    EH = E * H

    # ---- lane-dense padding (zero-pad to multiples of 128) --------------------
    Dp = _round_up(D, 128)
    EHp = _round_up(EH, 128)
    Cp = _round_up(C, 128)

    mm_dtype = jnp.bfloat16 if use_bf16 else jnp.float32
    in_item = jnp.dtype(mm_dtype).itemsize

    # Flatten the ensemble axis into the matmul dims; column order (e, h) -> e*H + h.
    w1f = jnp.transpose(w1, (1, 0, 2)).reshape(D, EH)
    w1k = jnp.zeros((Dp, EHp), mm_dtype).at[:D, :EH].set(w1f.astype(mm_dtype))
    b1k = jnp.zeros((1, EHp), jnp.float32).at[:, :EH].set(
        b1.reshape(1, EH).astype(jnp.float32))
    w2k = jnp.zeros((EHp, Cp), mm_dtype).at[:EH, :C].set(
        w2.reshape(EH, C).astype(mm_dtype))
    b2sum = b2.reshape(E, C).astype(jnp.float32).sum(axis=0)   # (C,), added in wrapper

    # ---- batch-tile selection --------------------------------------------------
    sub = 16 if use_bf16 else 8          # bf16 packs two rows per sublane
    if batch_tile is not None:
        bt = max(sub, _round_up(int(batch_tile), sub))
    else:
        ntiles = max(1, pl.cdiv(B, 256))      # target ~256-row tiles (MXU M)
        if ntiles == 1 and B > 2 * sub:
            ntiles = 2                        # >=2 tiles: pipelining + megacore/2-TC
        bt = max(sub, _round_up(pl.cdiv(B, ntiles), sub))

    # ---- generation-aware VMEM budget ------------------------------------------
    try:
        cap = int(pltpu.get_tpu_info().vmem_capacity_bytes)
    except Exception:
        cap = 64 << 20                        # safe floor for every TPU generation

    def vmem_need(bt_):
        return (2 * bt_ * Dp * in_item        # x tile, double-buffered
                + 2 * Dp * EHp * in_item      # W1f (constant index; 2x conservative)
                + 2 * EHp * 4                 # b1
                + 2 * EHp * Cp * in_item      # W2s
                + 2 * Cp * 4                  # output block
                + bt_ * EHp * 4               # f32 intermediate h
                + EHp * 4)                    # hsum

    budget = int(cap * 0.75)
    while vmem_need(bt) > budget and bt > sub:
        bt = max(sub, _round_up(max(bt // 2, sub), sub))
    # TODO(synk): for E*H so large that even bt==sub overflows the budget (v7x 64 MiB),
    # add an EH-chunked "arbitrary" reduction grid axis instead of shrinking bt further.

    P = pl.cdiv(B, bt)
    B_pad = P * bt
    need_mask = (B_pad != B)

    xk = jnp.zeros((B_pad, Dp), mm_dtype).at[:B, :D].set(x.astype(mm_dtype))

    vmem_limit = int(min(cap, max(vmem_need(bt) + (4 << 20), 16 << 20)))

    flops = 2 * B_pad * Dp * EHp + 2 * P * EHp * Cp
    bytes_accessed = (B_pad * Dp * in_item + Dp * EHp * in_item
                      + EHp * 4 + EHp * Cp * in_item + P * Cp * 4)

    partial = pl.pallas_call(
        _make_kernel(bt, B, need_mask),
        out_shape=jax.ShapeDtypeStruct((P, 1, Cp), jnp.float32),
        grid_spec=pltpu.PrefetchScalarGridSpec(
            num_scalar_prefetch=0,
            grid=(P,),
            in_specs=[
                pl.BlockSpec((bt, Dp), lambda p: (p, 0)),     # x tile (pipelined)
                pl.BlockSpec((Dp, EHp), lambda p: (0, 0)),    # W1f (resident)
                pl.BlockSpec((1, EHp), lambda p: (0, 0)),     # b1  (resident)
                pl.BlockSpec((EHp, Cp), lambda p: (0, 0)),    # W2s (resident)
            ],
            out_specs=pl.BlockSpec((1, 1, Cp), lambda p: (p, 0, 0)),
        ),
        compiler_params=pltpu.CompilerParams(
            dimension_semantics=("parallel",),
            vmem_limit_bytes=vmem_limit,
        ),
        cost_estimate=pl.CostEstimate(
            flops=flops, transcendentals=0, bytes_accessed=bytes_accessed),
    )(xk, w1k, b1k, w2k)

    # Tiny final reduction over batch-tile partials + folded b2 bias + normalization.
    total = partial.reshape(P, Cp).sum(axis=0)[:C]
    return (total + jnp.float32(B) * b2sum) / jnp.float32(E * B)


def ensemble_reference(x, w1, b1, w2, b2):
    # pure-JAX reference mirroring the PyTorch forward literally
    outs = []
    for e in range(w1.shape[0]):
        h = jnp.maximum(x @ w1[e] + b1[e], 0.0)
        outs.append(h @ w2[e] + b2[e])          # (B, C)
    cat = jnp.concatenate(outs, axis=0)          # (E*B, C)
    return cat.mean(axis=0)                      # (C,)


if __name__ == "__main__":
    # small shapes: batch=8, features=32, hidden=32, classes=4, ensemble=3
    B, D, H, C, E = 8, 32, 32, 4, 3

    key = jax.random.PRNGKey(0)
    kx, k1, k2, k3, k4 = jax.random.split(key, 5)
    x = jax.random.normal(kx, (B, D), dtype=jnp.float32)
    w1 = jax.random.normal(k1, (E, D, H), dtype=jnp.float32) * 0.1
    b1 = jax.random.normal(k2, (E, 1, H), dtype=jnp.float32) * 0.1
    w2 = jax.random.normal(k3, (E, H, C), dtype=jnp.float32) * 0.1
    b2 = jax.random.normal(k4, (E, 1, C), dtype=jnp.float32) * 0.1

    ref = ensemble_reference(x, w1, b1, w2, b2)

    # f32 path (exact up to f32 reordering)
    out_f32 = jax.block_until_ready(ensemble_forward(x, w1, b1, w2, b2, use_bf16=False))
    assert out_f32.shape == (C,)
    assert jnp.allclose(out_f32, ref, atol=1e-4, rtol=1e-4), (out_f32, ref)

    # bf16-MXU path (default): f32 accumulation, slightly different rounding.
    out_bf16 = jax.block_until_ready(ensemble_forward(x, w1, b1, w2, b2, use_bf16=True))
    assert out_bf16.shape == (C,)
    assert jnp.allclose(out_bf16, ref, atol=2e-2, rtol=2e-2), (out_bf16, ref)

    # multi-tile path (P >= 2) with batch padding + in-kernel row masking.
    B2 = 40
    x2 = jax.random.normal(jax.random.PRNGKey(7), (B2, D), dtype=jnp.float32)
    ref2 = ensemble_reference(x2, w1, b1, w2, b2)
    out_tiled = jax.block_until_ready(
        ensemble_forward(x2, w1, b1, w2, b2, batch_tile=16, use_bf16=False))
    assert out_tiled.shape == (C,)
    assert jnp.allclose(out_tiled, ref2, atol=1e-4, rtol=1e-4), (out_tiled, ref2)

    print("KERNEL_OK")
</pallas_src>

<mosaic_0001>
module attributes {stable_mosaic.version = 11 : i64} {
  func.func @kernel(%arg0: i32, %arg1: memref<8x128xf32, #tpu.memory_space<vmem>>, %arg2: memref<128x128xf32, #tpu.memory_space<vmem>>, %arg3: memref<1x128xf32, #tpu.memory_space<vmem>>, %arg4: memref<128x128xf32, #tpu.memory_space<vmem>>, %arg5: memref<1x1x128xf32, #tpu.memory_space<vmem>>) attributes {dimension_semantics = [#tpu.dimension_semantics<parallel>], iteration_bounds = array<i64: 1>, scalar_prefetch = 0 : i64, scratch_operands = 0 : i64, tpu.core_type = #tpu.core_type<tc>, window_params = [{transform_indices = @transform_0, window_bounds = array<i64: 8, 128>}, {pipeline_mode = #tpu.pipeline_mode<synchronous>, transform_indices = @transform_1, window_bounds = array<i64: 128, 128>}, {pipeline_mode = #tpu.pipeline_mode<synchronous>, transform_indices = @transform_2, window_bounds = array<i64: 1, 128>}, {pipeline_mode = #tpu.pipeline_mode<synchronous>, transform_indices = @transform_3, window_bounds = array<i64: 128, 128>}, {transform_indices = @transform_4, window_bounds = array<i64: 1, 1, 128>}]} {
    %c0 = arith.constant 0 : index
    %c0_0 = arith.constant 0 : index
    %0 = vector.load %arg1[%c0, %c0_0] : memref<8x128xf32, #tpu.memory_space<vmem>>, vector<8x128xf32>
    %c0_1 = arith.constant 0 : index
    %c0_2 = arith.constant 0 : index
    %1 = vector.load %arg2[%c0_1, %c0_2] : memref<128x128xf32, #tpu.memory_space<vmem>>, vector<128x128xf32>
    %cst = arith.constant dense<0.000000e+00> : vector<8x128xf32>
    %2 = tpu.matmul %0, %1, %cst {dimension_numbers = #tpu.dot_dimension_numbers<[1], [0], [0], [1], [0, 0, 1, 1], [], []>} : vector<8x128xf32>, vector<128x128xf32>, vector<8x128xf32> -> vector<8x128xf32>
    %c0_3 = arith.constant 0 : index
    %c0_4 = arith.constant 0 : index
    %3 = vector.load %arg3[%c0_3, %c0_4] : memref<1x128xf32, #tpu.memory_space<vmem>>, vector<1x128xf32>
    %4 = vector.broadcast %3 : vector<1x128xf32> to vector<8x128xf32>
    %5 = arith.addf %2, %4 : vector<8x128xf32>
    %cst_5 = arith.constant 0.000000e+00 : f32
    %6 = vector.broadcast %cst_5 : f32 to vector<8x128xf32>
    %7 = arith.maximumf %5, %6 : vector<8x128xf32>
    %cst_6 = arith.constant dense<0.000000e+00> : vector<128xf32>
    %8 = vector.multi_reduction <add>, %7, %cst_6 [0] : vector<8x128xf32> to vector<128xf32>
    %9 = vector.shape_cast %8 : vector<128xf32> to vector<1x128xf32>
    %c0_7 = arith.constant 0 : index
    %c0_8 = arith.constant 0 : index
    %10 = vector.load %arg4[%c0_7, %c0_8] : memref<128x128xf32, #tpu.memory_space<vmem>>, vector<128x128xf32>
    %cst_9 = arith.constant dense<0.000000e+00> : vector<1x128xf32>
    %11 = tpu.matmul %9, %10, %cst_9 {dimension_numbers = #tpu.dot_dimension_numbers<[1], [0], [0], [1], [0, 0, 1, 1], [], []>} : vector<1x128xf32>, vector<128x128xf32>, vector<1x128xf32> -> vector<1x128xf32>
    %12 = vector.shape_cast %11 : vector<1x128xf32> to vector<1x1x128xf32>
    %c0_10 = arith.constant 0 : index
    %c0_11 = arith.constant 0 : index
    %c0_12 = arith.constant 0 : index
    %13 = vector.load %arg5[%c0_10, %c0_11, %c0_12] : memref<1x1x128xf32, #tpu.memory_space<vmem>>, vector<1x1x128xf32>
    tpu.vector_store %arg5[%c0_10, %c0_11, %c0_12], %12 {strides = array<i32>} : memref<1x1x128xf32, #tpu.memory_space<vmem>>, vector<1x1x128xf32>,
    return
  }
  func.func @transform_0(%arg0: i32) -> (i32, i32) {
    %c0_i32 = arith.constant 0 : i32
    %c0_i32_0 = arith.constant 0 : i32
    return %arg0, %c0_i32 : i32, i32
  }
  func.func @transform_1(%arg0: i32) -> (i32, i32) {
    %c0_i32 = arith.constant 0 : i32
    %c0_i32_0 = arith.constant 0 : i32
    %c0_i32_1 = arith.constant 0 : i32
    return %c0_i32, %c0_i32_0 : i32, i32
  }
  func.func @transform_2(%arg0: i32) -> (i32, i32) {
    %c0_i32 = arith.constant 0 : i32
    %c0_i32_0 = arith.constant 0 : i32
    %c0_i32_1 = arith.constant 0 : i32
    return %c0_i32, %c0_i32_0 : i32, i32
  }
  func.func @transform_3(%arg0: i32) -> (i32, i32) {
    %c0_i32 = arith.constant 0 : i32
    %c0_i32_0 = arith.constant 0 : i32
    %c0_i32_1 = arith.constant 0 : i32
    return %c0_i32, %c0_i32_0 : i32, i32
  }
  func.func @transform_4(%arg0: i32) -> (i32, i32, i32) {
    %c0_i32 = arith.constant 0 : i32
    %c0_i32_0 = arith.constant 0 : i32
    %c0_i32_1 = arith.constant 0 : i32
    return %arg0, %c0_i32, %c0_i32_0 : i32, i32, i32
  }
}

</mosaic_0001>

<bundles_post_ra>
// kernel: tpu_custom_call.1
= control target key start
LH: loop header
LB: loop body
LE: loop exit
PB: predicated region body
PF: predicated region fallthrough
CT: control target
= control target key end

     0   :  { %9 = vsyncpa [#allocation3], 0  ;;  %s624_s0 = inlined_call_operand.hbm [shape: f32[8,128], index: 0, kind: input, shape index: {}]   ;;  %s625_s1 = inlined_call_operand.hbm [shape: f32[128,128], index: 1, kind: input, shape index: {}]   ;;  %s626_s2 = inlined_call_operand.vmem [shape: f32[1,128], index: 2, kind: input, shape index: {}]   ;;  %s627_s3 = inlined_call_operand.hbm [shape: f32[128,128], index: 3, kind: input, shape index: {}]   ;;  %s628_s4 = inlined_call_operand.hbm [shape: f32[1,1,128], index: 4, kind: output, shape index: {}]  }
   0x1   :  { %10 = vsyncpa [#allocation6], 0 }
   0x2   :  { %11 = vsyncpa [#allocation4], 0  ;;  %s517_s15 = smov [#allocation5]   ;;  %s423_s19 = scalar_lea.hbm %s625_s1, 2048 }
   0x3   :  { %s27_s16 = sshll.u32 %s517_s15, 4  ;;  %p424_p0 = scmp.ne.s32.totalorder %s625_s1, %s423_s19  ;;  %s28_s16 = int_to_ptr.vmem [resolvable:$true] %s27_s16 }
   0x4   :  { %p427_p1 = scmp.lt.u32.totalorder %s423_s19, %s625_s1 }
   0x6   :  { %p429_p2 = pnand %p427_p1, %p424_p0 }
   0x8   :  { %432 = shalt.err (!%p429_p2)
}
   0x9   :  { %s433_s24 = scalar_lea.vmem %s28_s16, 2048  ;;  %p438_p4 = scmp.lt.s32.totalorder %s28_s16, %s28_s16 }
   0xa   :  { %p434_p3 = scmp.ne.s32.totalorder %s28_s16, %s433_s24  ;;  %p439_p5 = scmp.lt.s32.totalorder %s433_s24, %s433_s24 }
   0xc   :  { %p440_p6 = por %p439_p5, %p438_p4 }
   0xe   :  { %p441_p7 = pnand %p440_p6, %p434_p3 }
  0x10   :  { %444 = shalt.err (!%p441_p7)
}
  0x11   :  { %s518_s25 = smov 128   ;;  %s519_s26 = smov 8  }
  0x12   :  { %33 = dma.hbm_to_vmem [thread:$0]  %s625_s1, 2048, %s28_s16, [#allocation6], %s518_s25, %s518_s25, %s519_s26  }
  0x13   :  { %s520_s29 = smov [#allocation2]   ;;  %s521_s5 = smov [#allocation7]  }
  0x14   :  { %s18_s30 = sshll.u32 %s520_s29, 4  ;;  %s41_s6 = sshll.u32 %s521_s5, 4  ;;  %s19_s30 = int_to_ptr.vmem [resolvable:$true] %s18_s30  ;;  %s42_s6 = int_to_ptr.vmem [resolvable:$true] %s41_s6 }
  0x15   :  { %s445_s9 = scalar_lea.hbm %s624_s0, 128 }
  0x16   :  { %p446_p8 = scmp.ne.s32.totalorder %s624_s0, %s445_s9  ;;  %p449_p9 = scmp.lt.u32.totalorder %s445_s9, %s624_s0 }
  0x18   :  { %p451_p10 = pnand %p449_p9, %p446_p8 }
  0x1a   :  { %454 = shalt.err (!%p451_p10)
}
  0x1b   :  { %s455_s1 = scalar_lea.vmem %s19_s30, 128  ;;  %p460_p12 = scmp.lt.s32.totalorder %s19_s30, %s19_s30 }
  0x1c   :  { %p456_p11 = scmp.ne.s32.totalorder %s19_s30, %s455_s1  ;;  %p461_p13 = scmp.lt.s32.totalorder %s455_s1, %s455_s1 }
  0x1e   :  { %p462_p0 = por %p461_p13, %p460_p12 }
  0x20   :  { %p463_p1 = pnand %p462_p0, %p456_p11 }
  0x22   :  { %466 = shalt.err (!%p463_p1)
}
  0x23   :  { %21 = dma.hbm_to_vmem [thread:$0]  %s624_s0, 128, %s19_s30, [#allocation3]  }
  0x24   :  { %s467_s18 = scalar_lea.hbm %s627_s3, 2048 }
  0x25   :  { %p468_p2 = scmp.ne.s32.totalorder %s627_s3, %s467_s18  ;;  %p471_p3 = scmp.lt.u32.totalorder %s467_s18, %s627_s3 }
  0x27   :  { %p473_p4 = pnand %p471_p3, %p468_p2 }
  0x29   :  { %476 = shalt.err (!%p473_p4)
}
  0x2a   :  { %s477_s23 = scalar_lea.vmem %s42_s6, 2048  ;;  %p482_p6 = scmp.lt.s32.totalorder %s42_s6, %s42_s6 }
  0x2b   :  { %p478_p5 = scmp.ne.s32.totalorder %s42_s6, %s477_s23  ;;  %p483_p7 = scmp.lt.s32.totalorder %s477_s23, %s477_s23 }
  0x2d   :  { %p484_p8 = por %p483_p7, %p482_p6 }
  0x2f   :  { %p485_p9 = pnand %p484_p8, %p478_p5 }
  0x31   :  { %488 = shalt.err (!%p485_p9)
}
  0x32   :  { %47 = dma.hbm_to_vmem [thread:$0]  %s627_s3, 2048, %s42_s6, [#allocation6], %s518_s25, %s518_s25, %s519_s26  }
  0x33   :  { %511 = dma.done.wait [#allocation3], 128  }
  0x34   :  { %512 = vsyncadd [#allocation3], 4294967168 }
  0x35   :  { %513 = dma.done.wait [#allocation6], 4096  }
  0x36   :  { %514 = vsyncadd [#allocation6], 4294963200  ;;  %v522_v0 = vmov 0.0|0.0   ;;  %vm523_vm0 = vmmov 0   ;;  %v524_v1 = vmov 0.0   ;;  %v58_v2 = vld [vmem:[#allocation5] sm:$0xff] }
  0x37   :  { %366 = vmatprep.subr.bf16.mxu0 %v522_v0  ;;  %328 = vmatprep.mubr.msk.f32.mxu0 %vm523_vm0, %v524_v1  ;;  %v59_v3 = vld [vmem:[#allocation5 + $0x8] sm:$0xff]  ;;  %v60_v4 = vld [vmem:[#allocation5 + $0x10] sm:$0xff]  ;;  %v61_v6 = vld [vmem:[#allocation5 + $0x18] sm:$0xff]  ;;  %s525_s26 = smov [#allocation8]  }
  0x38   :  { %390 = vmatprep.subr.bf16.mxu1 %v522_v0  ;;  %363 = vmatprep.mubr.msk.f32.mxu1 %vm523_vm0, %v524_v1  ;;  %v367_v5 = vpack.c.bf16 %v59_v3, %v58_v2  ;;  %v370_v7 = vpack.c.bf16 %v61_v6, %v60_v4  ;;  %v62_v8 = vld [vmem:[#allocation5 + $0x20] sm:$0xff]  ;;  %v63_v9 = vld [vmem:[#allocation5 + $0x28] sm:$0xff]  ;;  %v160_v12 = vld [vmem:[#allocation7 + $0x10] sm:$0xff]  ;;  %s251_s27 = sshll.u32 %s525_s26, 4  ;;  %s252_s27 = int_to_ptr.vmem [resolvable:$true] %s251_s27 }
  0x39   :  { %v158_v10 = vld [vmem:[#allocation7] sm:$0xff]  ;;  %v159_v11 = vld [vmem:[#allocation7 + $0x8] sm:$0xff]  ;;  %v161_v13 = vld [vmem:[#allocation7 + $0x18] sm:$0xff]  ;;  %v373_v14 = vpack.c.bf16 %v63_v9, %v62_v8  ;;  %s489_s28 = scalar_lea.vmem %s252_s27, 16  ;;  %p494_p11 = scmp.lt.s32.totalorder %s252_s27, %s252_s27 }
  0x3a   :  { %368 = vmatpush3.bf16.msra.mxu0 %v367_v5  ;;  %v391_v15 = vpack.c.bf16 %v159_v11, %v158_v10  ;;  %v64_v16 = vld [vmem:[#allocation5 + $0x30] sm:$0xff]  ;;  %v65_v17 = vld [vmem:[#allocation5 + $0x38] sm:$0xff]  ;;  %v394_v18 = vpack.c.bf16 %v161_v13, %v160_v12  ;;  %v162_v19 = vld [vmem:[#allocation7 + $0x20] sm:$0xff]  ;;  %p490_p10 = scmp.ne.s32.totalorder %s252_s27, %s489_s28 }
  0x3b   :  { %369 = vmatprep.subr.bf16.mxu0 %v522_v0  ;;  %v163_v20 = vld [vmem:[#allocation7 + $0x28] sm:$0xff]  ;;  %v376_v21 = vpack.c.bf16 %v65_v17, %v64_v16  ;;  %v66_v22 = vld [vmem:[#allocation5 + $0x40] sm:$0xff]  ;;  %v164_v25 = vld [vmem:[#allocation7 + $0x30] sm:$0xff] }
  0x3c   :  { %392 = vmatpush3.bf16.msra.mxu1 %v391_v15  ;;  %v67_v23 = vld [vmem:[#allocation5 + $0x48] sm:$0xff]  ;;  %v397_v24 = vpack.c.bf16 %v163_v20, %v162_v19  ;;  %v165_v26 = vld [vmem:[#allocation7 + $0x38] sm:$0xff]  ;;  %v68_v28 = vld [vmem:[#allocation5 + $0x50] sm:$0xff] }
  0x3d   :  { %393 = vmatprep.subr.bf16.mxu1 %v522_v0  ;;  %v379_v27 = vpack.c.bf16 %v67_v23, %v66_v22  ;;  %v69_v29 = vld [vmem:[#allocation5 + $0x58] sm:$0xff]  ;;  %v400_v30 = vpack.c.bf16 %v165_v26, %v164_v25  ;;  %v70_v32 = vld [vmem:[#allocation5 + $0x60] sm:$0xff]  ;;  %v71_v33 = vld [vmem:[#allocation5 + $0x68] sm:$0xff] }
  0x3e   :  { %371 = vmatpush3.bf16.msra.mxu0 %v370_v7  ;;  %v382_v31 = vpack.c.bf16 %v69_v29, %v68_v28  ;;  %v385_v34 = vpack.c.bf16 %v71_v33, %v70_v32  ;;  %v72_v35 = vld [vmem:[#allocation5 + $0x70] sm:$0xff]  ;;  %v73_v36 = vld [vmem:[#allocation5 + $0x78] sm:$0xff]  ;;  %v166_v39 = vld [vmem:[#allocation7 + $0x40] sm:$0xff] }
  0x3f   :  { %372 = vmatprep.subr.bf16.mxu0 %v522_v0  ;;  %v388_v37 = vpack.c.bf16 %v73_v36, %v72_v35  ;;  %v57_v38 = vld [vmem:[#allocation2] sm:$0xff]  ;;  %v167_v40 = vld [vmem:[#allocation7 + $0x48] sm:$0xff]  ;;  %v168_v42 = vld [vmem:[#allocation7 + $0x50] sm:$0xff] }
  0x40   :  { %395 = vmatpush3.bf16.msra.mxu1 %v394_v18  ;;  %v403_v41 = vpack.c.bf16 %v167_v40, %v166_v39  ;;  %v169_v43 = vld [vmem:[#allocation7 + $0x58] sm:$0xff]  ;;  %v170_v45 = vld [vmem:[#allocation7 + $0x60] sm:$0xff]  ;;  %v171_v46 = vld [vmem:[#allocation7 + $0x68] sm:$0xff] }
  0x41   :  { %396 = vmatprep.subr.bf16.mxu1 %v522_v0  ;;  %v406_v44 = vpack.c.bf16 %v169_v43, %v168_v42  ;;  %v409_v47 = vpack.c.bf16 %v171_v46, %v170_v45  ;;  %v172_v48 = vld [vmem:[#allocation7 + $0x70] sm:$0xff]  ;;  %v173_v49 = vld [vmem:[#allocation7 + $0x78] sm:$0xff] }
  0x42   :  { %374 = vmatpush3.bf16.msra.mxu0 %v373_v14  ;;  %v412_v50 = vpack.c.bf16 %v173_v49, %v172_v48  ;;  %v261_v51 = vld [vmem:[%s626_s2] ss:$0 sm:$0xff]  ;;  %s493_s2 = scalar_lea.vmem %s252_s27, 32 }
  0x43   :  { %375 = vmatprep.subr.bf16.mxu0 %v522_v0  ;;  %p495_p12 = scmp.lt.s32.totalorder %s493_s2, %s489_s28 }
  0x44   :  { %398 = vmatpush3.bf16.msra.mxu1 %v397_v24 }
  0x45   :  { %399 = vmatprep.subr.bf16.mxu1 %v522_v0  ;;  %p496_p13 = por %p495_p12, %p494_p11 }
  0x46   :  { %377 = vmatpush3.bf16.msra.mxu0 %v376_v21 }
  0x47   :  { %378 = vmatprep.subr.bf16.mxu0 %v522_v0  ;;  %p497_p0 = pnand %p496_p13, %p490_p10 }
  0x48   :  { %401 = vmatpush3.bf16.msra.mxu1 %v400_v30 }
  0x49   :  { %402 = vmatprep.subr.bf16.mxu1 %v522_v0 }
  0x4a   :  { %380 = vmatpush3.bf16.msra.mxu0 %v379_v27 }
  0x4b   :  { %381 = vmatprep.subr.bf16.mxu0 %v522_v0 }
  0x4c   :  { %404 = vmatpush3.bf16.msra.mxu1 %v403_v41 }
  0x4d   :  { %405 = vmatprep.subr.bf16.mxu1 %v522_v0 }
  0x4e   :  { %383 = vmatpush3.bf16.msra.mxu0 %v382_v31 }
  0x4f   :  { %384 = vmatprep.subr.bf16.mxu0 %v522_v0 }
  0x50   :  { %407 = vmatpush3.bf16.msra.mxu1 %v406_v44 }
  0x51   :  { %408 = vmatprep.subr.bf16.mxu1 %v522_v0 }
  0x52   :  { %386 = vmatpush3.bf16.msra.mxu0 %v385_v34 }
  0x53   :  { %387 = vmatprep.subr.bf16.mxu0 %v522_v0 }
  0x54   :  { %410 = vmatpush3.bf16.msra.mxu1 %v409_v47 }
  0x55   :  { %411 = vmatprep.subr.bf16.mxu1 %v522_v0 }
  0x56   :  { %389 = vmatpush3.bf16.msra.mxu0 %v388_v37 }
  0x58   :  { %413 = vmatpush3.bf16.msra.mxu1 %v412_v50 }
  0x59   :  { %329 = vmatmul.mubr.f32.vlgmr.msra.gmra.mrb[0].mxu0 %v57_v38 }
 0x12c   :  { %v147_v52 = vpop.f32.mrb[0].mxu0 }
 0x12d   :  { %v148_v53 = vadd.f32 %v261_v51, %v147_v52  ;;  %v330_v54 = vpop.f32.mrb[1].mxu0 }
 0x12f   :  { %v151_v55 = vmax.f32 %v148_v53, 0.0 }
 0x131   :  { %v152_v56 = vrot.slane %v151_v55, 4 }
 0x133   :  { %v153_v57 = vadd.f32 %v152_v56, %v151_v55 }
 0x135   :  { %v154_v58 = vrot.slane %v153_v57, 2 }
 0x137   :  { %v155_v59 = vadd.f32 %v154_v58, %v153_v57 }
 0x139   :  { %v156_v60 = vrot.slane %v155_v59, 1 }
 0x13b   :  { %v157_v61 = vadd.f32 %v156_v60, %v155_v59 }
 0x13d   :  { %364 = vmatmul.mubr.f32.vlgmr.msra.gmra.mrb[0].mxu1 %v157_v61 }
 0x210   :  { %v240_v62 = vpop.f32.mrb[0].mxu1 }
 0x211   :  { %244 = vst [vmem:[#allocation8] sm:$0x1] %v240_v62  ;;  %v365_v63 = vpop.f32.mrb[1].mxu1 }
 0x212   :  { %500 = shalt.err (!%p497_p0)
}
 0x213   :  { %s501_s5 = scalar_lea.hbm %s628_s4, 16 }
 0x214   :  { %p502_p1 = scmp.ne.s32.totalorder %s628_s4, %s501_s5  ;;  %p505_p2 = scmp.lt.u32.totalorder %s501_s5, %s628_s4 }
 0x216   :  { %p507_p3 = pnand %p505_p2, %p502_p1 }
 0x218   :  { %510 = shalt.err (!%p507_p3)
}
 0x219   :  { %254 = dma.vmem_to_hbm [thread:$0]  %s252_s27, 16, %s628_s4, [#allocation4]  }
 0x21a   :  { %515 = dma.done.wait [#allocation4], 16  }
 0x21b   :  { %516 = vsyncadd [#allocation4], 4294967280 }
 0x21c   :  { %258 = vsyncpa [#allocation3], 1 }
 0x21d   :  { %259 = vsyncpa [#allocation6], 1 }
 0x21e   :  { %260 = vsyncpa [#allocation4], 1 }

</bundles_post_ra>
